<compile_context>
chip_gen: v5e
topology: v5e:2x2
jax: 0.10.0
libtpu: 0.0.40
codegen_flags: <defaults>
</compile_context>

<pallas_src>
import functools

import jax
import jax.numpy as jnp
from jax import lax
from jax.experimental import pallas as pl
from jax.experimental.pallas import tpu as pltpu

_MiB = 1024 * 1024


def _upsample_kernel(x_ref, m_ref, o_ref, *, s, w, k_win, n_win, precision):
    """x_ref: (Rb, f*w); m_ref: (k_win, s*k_win); o_ref: (Rb, f*s*s*w).

    One MXU matmul per window does the W-axis interleave only; the H-axis
    replication is s plain stores of each expanded segment into the
    lane-dense flattened output view (no MXU work, no s× f32 intermediate).
    """
    seg_w = min(k_win, w)        # input columns per image row inside a window
    segs = max(1, k_win // w)    # image rows covered by one window
    for j in range(n_win):
        y = jnp.dot(
            x_ref[:, j * k_win:(j + 1) * k_win],
            m_ref[...],
            preferred_element_type=jnp.float32,
            precision=precision,
        ).astype(o_ref.dtype)    # (Rb, s*k_win): W-interleaved row data
        for h in range(segs):
            seg = y[:, h * s * seg_w:(h + 1) * s * seg_w]
            pos = j * k_win + h * seg_w
            row = pos // w       # image row index within the super-row
            col = pos % w        # starting column of this window in that row
            for i in range(s):   # H replication: s identical lane-slab stores
                off = (row * s + i) * (s * w) + col * s
                o_ref[:, off:off + s * seg_w] = seg


def _choose_window(total_rows, w):
    """Pick (f, k_win): rows folded per super-row and the matmul window width.

    Targets a lane-dense contraction dim (k_win ~ 128..512) so both the input
    tile lanes and the MXU K dimension are unmasked."""
    if w >= 128:
        if w <= 512:
            return 1, w
        best, d = 0, 1
        while d * d <= w:                       # largest divisor of w in [128, 512]
            if w % d == 0:
                for c in (d, w // d):
                    if 128 <= c <= 512 and c > best:
                        best = c
            d += 1
        # TODO(synk): very wide rows with no divisor in [128,512] keep a single
        # window of width w (large m); pad-and-chunk if this ever matters.
        return 1, (best if best else w)
    target = min(-(-128 // w), 32)              # smallest f with f*w >= 128 (capped)
    limit = max(target, 256 // w)
    for f in range(target, min(total_rows, limit) + 1):
        if total_rows % f == 0:
            return f, f * w
    for f in range(min(target, total_rows), 0, -1):   # fallback: f*w < 128
        if total_rows % f == 0:
            return f, f * w
    return 1, w


def _choose_row_block(n_rows, row_out_bytes, itemsize, bytes_target):
    """Sublane-aligned row-block giving ~bytes_target output tiles, >= 2 grid
    steps when possible, and preferably an even step count (v7x megacore)."""
    sub = 8 * max(1, 4 // itemsize)             # 8 rows for f32, 16 for bf16/f16
    cap = max(sub, min(n_rows, bytes_target // max(row_out_bytes, 1)))
    if n_rows >= 2 * sub:
        cap = min(cap, max(sub, n_rows // 2))   # guarantee >= 2 grid steps
    rb = max(sub, cap - cap % sub)
    rb = min(rb, n_rows)
    steps = pl.cdiv(n_rows, rb)
    if steps > 1 and steps % 2 == 1:            # prefer even #steps for 2 TCs
        cand = pl.cdiv(n_rows, steps + 1)
        cand = max(sub, cand + (-cand) % sub)
        if cand <= rb and pl.cdiv(n_rows, cand) % 2 == 0:
            rb = cand
    return rb


@functools.partial(jax.jit, static_argnames=("scale_factor", "mode"))
def upsample(x, *, scale_factor, mode="nearest"):
    """Pallas TPU equivalent of the PyTorch Upsample module's forward."""
    assert mode == "nearest", "only nearest-neighbor upsampling is implemented"
    s = int(scale_factor)
    assert float(scale_factor) == s and s >= 1, (
        "only positive integer scale factors are supported")
    assert jnp.issubdtype(x.dtype, jnp.floating), "only float dtypes supported"
    N, C, H, W = x.shape
    if s == 1:
        return x
    Ho, Wo = H * s, W * s
    itemsize = x.dtype.itemsize
    R = N * C * H

    f, k_win = _choose_window(R, W)
    n_win = (f * W) // k_win
    R_sup = R // f                    # super-rows (f image rows each)
    in_cols = f * W
    out_cols = f * s * s * W          # lane-dense flattened output super-row

    # Exact 0/1 W-interleave matrix for one matmul window (one nonzero / col).
    seg_w = min(k_win, W)
    u = jnp.arange(k_win)
    v = jnp.arange(s * k_win)
    m = ((u[:, None] // seg_w == v[None, :] // (s * seg_w))
         & (u[:, None] % seg_w == (v[None, :] % (s * seg_w)) // s)
         ).astype(x.dtype)

    # Free row-major reshape of the NCHW tensor.
    x2 = x.reshape(R_sup, in_cols)

    # ---- per-generation VMEM budget / tile sizing ----
    try:
        vmem_cap = int(pltpu.get_tpu_info().vmem_capacity_bytes)
    except Exception:                 # pragma: no cover - conservative fallback
        vmem_cap = 64 * _MiB
    if vmem_cap >= 96 * _MiB:         # v5e / v6e: 128 MiB VMEM
        vmem_limit, tile_target = 64 * _MiB, 12 * _MiB
    else:                             # v7x: 64 MiB VMEM per TensorCore
        vmem_limit, tile_target = 44 * _MiB, 6 * _MiB
    m_bytes = k_win * s * k_win * itemsize
    vmem_limit = min(max(vmem_limit, 2 * m_bytes + 8 * _MiB),
                     int(0.9 * vmem_cap))
    # usage ~= out_tile*(2 + 2/s^2 + 4/(s*itemsize)) + 2*m (double-buffered)
    overhead = 2.0 + 2.0 / (s * s) + 4.0 / (s * itemsize)
    avail = vmem_limit - 2 * m_bytes - 2 * _MiB
    tile_target = max(_MiB, min(tile_target, int(avail / overhead)))

    total_out_bytes = R_sup * out_cols * itemsize
    if total_out_bytes <= 2 * _MiB:
        rb = R_sup                    # tiny tensor: single whole-array block
    else:
        rb = _choose_row_block(R_sup, out_cols * itemsize, itemsize, tile_target)
    grid = (pl.cdiv(R_sup, rb),)

    precision = (lax.Precision.HIGHEST if itemsize == 4
                 else lax.Precision.DEFAULT)
    kernel = functools.partial(_upsample_kernel, s=s, w=W,
                               k_win=k_win, n_win=n_win, precision=precision)

    out2 = pl.pallas_call(
        kernel,
        out_shape=jax.ShapeDtypeStruct((R_sup, out_cols), x.dtype),
        grid_spec=pltpu.PrefetchScalarGridSpec(
            num_scalar_prefetch=0,
            grid=grid,
            in_specs=[
                pl.BlockSpec((rb, in_cols), lambda i: (i, 0)),
                # constant block index -> fetched once, stays resident in VMEM
                pl.BlockSpec((k_win, s * k_win), lambda i: (0, 0)),
            ],
            out_specs=pl.BlockSpec((rb, out_cols), lambda i: (i, 0)),
        ),
        compiler_params=pltpu.CompilerParams(
            dimension_semantics=("parallel",),
            vmem_limit_bytes=vmem_limit,
        ),
        cost_estimate=pl.CostEstimate(
            flops=2 * R_sup * out_cols,                  # ~pure data movement
            transcendentals=0,
            bytes_accessed=(1 + s * s) * R * W * itemsize,
        ),
    )(x2, m)

    return out2.reshape(N, C, Ho, Wo)


if __name__ == "__main__":
    key = jax.random.PRNGKey(0)

    # Main config: DCGAN-like f32, scale 2.
    N, C, H, W = 2, 4, 16, 16
    scale = 2
    x = jax.random.normal(key, (N, C, H, W), dtype=jnp.float32)

    y = jax.block_until_ready(upsample(x, scale_factor=scale, mode="nearest"))
    ref = jnp.repeat(jnp.repeat(x, scale, axis=2), scale, axis=3)
    assert y.shape == (N, C, H * scale, W * scale)
    assert y.dtype == x.dtype
    assert jnp.array_equal(y, ref), "mismatch vs reference nearest upsample (f32, s=2)"

    # Second config: bfloat16, non-power-of-two scale factor.
    x2 = jax.random.normal(jax.random.PRNGKey(1), (2, 3, 16, 8),
                           dtype=jnp.float32).astype(jnp.bfloat16)
    y2 = jax.block_until_ready(upsample(x2, scale_factor=3, mode="nearest"))
    ref2 = jnp.repeat(jnp.repeat(x2, 3, axis=2), 3, axis=3)
    assert y2.shape == (2, 3, 48, 24)
    assert y2.dtype == x2.dtype
    assert jnp.array_equal(y2, ref2), "mismatch vs reference nearest upsample (bf16, s=3)"

    print("KERNEL_OK")
</pallas_src>

<mosaic_0001>
module attributes {stable_mosaic.version = 11 : i64} {
  func.func @_upsample_kernel(%arg0: i32, %arg1: memref<16x128xf32, #tpu.memory_space<vmem>>, %arg2: memref<128x256xf32, #tpu.memory_space<vmem>>, %arg3: memref<16x512xf32, #tpu.memory_space<vmem>>) attributes {dimension_semantics = [#tpu.dimension_semantics<parallel>], iteration_bounds = array<i64: 1>, scalar_prefetch = 0 : i64, scratch_operands = 0 : i64, tpu.core_type = #tpu.core_type<tc>, window_params = [{transform_indices = @transform_0, window_bounds = array<i64: 16, 128>}, {pipeline_mode = #tpu.pipeline_mode<synchronous>, transform_indices = @transform_1, window_bounds = array<i64: 128, 256>}, {transform_indices = @transform_2, window_bounds = array<i64: 16, 512>}]} {
    %c0 = arith.constant 0 : index
    %c0_0 = arith.constant 0 : index
    %0 = vector.load %arg1[%c0, %c0_0] : memref<16x128xf32, #tpu.memory_space<vmem>>, vector<16x128xf32>
    %c0_1 = arith.constant 0 : index
    %c0_2 = arith.constant 0 : index
    %1 = vector.load %arg2[%c0_1, %c0_2] : memref<128x256xf32, #tpu.memory_space<vmem>>, vector<128x256xf32>
    %cst = arith.constant dense<0.000000e+00> : vector<16x256xf32>
    %2 = tpu.matmul %0, %1, %cst {dimension_numbers = #tpu.dot_dimension_numbers<[1], [0], [0], [1], [0, 0, 1, 1], [], []>, precision = #tpu.contract_precision<fp32>} : vector<16x128xf32>, vector<128x256xf32>, vector<16x256xf32> -> vector<16x256xf32>
    %3 = vector.extract_strided_slice %2 {offsets = [0, 0], sizes = [16, 32], strides = [1, 1]} : vector<16x256xf32> to vector<16x32xf32>
    %c0_3 = arith.constant 0 : index
    %c0_4 = arith.constant 0 : index
    %4 = vector.load %arg3[%c0_3, %c0_4] : memref<16x512xf32, #tpu.memory_space<vmem>>, vector<16x32xf32>
    tpu.vector_store %arg3[%c0_3, %c0_4], %3 {strides = array<i32>} : memref<16x512xf32, #tpu.memory_space<vmem>>, vector<16x32xf32>,
    %c0_5 = arith.constant 0 : index
    %c32 = arith.constant 32 : index
    %5 = vector.load %arg3[%c0_5, %c32] : memref<16x512xf32, #tpu.memory_space<vmem>>, vector<16x32xf32>
    tpu.vector_store %arg3[%c0_5, %c32], %3 {strides = array<i32>} : memref<16x512xf32, #tpu.memory_space<vmem>>, vector<16x32xf32>,
    %6 = vector.extract_strided_slice %2 {offsets = [0, 32], sizes = [16, 32], strides = [1, 1]} : vector<16x256xf32> to vector<16x32xf32>
    %c0_6 = arith.constant 0 : index
    %c64 = arith.constant 64 : index
    %7 = vector.load %arg3[%c0_6, %c64] : memref<16x512xf32, #tpu.memory_space<vmem>>, vector<16x32xf32>
    tpu.vector_store %arg3[%c0_6, %c64], %6 {strides = array<i32>} : memref<16x512xf32, #tpu.memory_space<vmem>>, vector<16x32xf32>,
    %c0_7 = arith.constant 0 : index
    %c96 = arith.constant 96 : index
    %8 = vector.load %arg3[%c0_7, %c96] : memref<16x512xf32, #tpu.memory_space<vmem>>, vector<16x32xf32>
    tpu.vector_store %arg3[%c0_7, %c96], %6 {strides = array<i32>} : memref<16x512xf32, #tpu.memory_space<vmem>>, vector<16x32xf32>,
    %9 = vector.extract_strided_slice %2 {offsets = [0, 64], sizes = [16, 32], strides = [1, 1]} : vector<16x256xf32> to vector<16x32xf32>
    %c0_8 = arith.constant 0 : index
    %c128 = arith.constant 128 : index
    %10 = vector.load %arg3[%c0_8, %c128] : memref<16x512xf32, #tpu.memory_space<vmem>>, vector<16x32xf32>
    tpu.vector_store %arg3[%c0_8, %c128], %9 {strides = array<i32>} : memref<16x512xf32, #tpu.memory_space<vmem>>, vector<16x32xf32>,
    %c0_9 = arith.constant 0 : index
    %c160 = arith.constant 160 : index
    %11 = vector.load %arg3[%c0_9, %c160] : memref<16x512xf32, #tpu.memory_space<vmem>>, vector<16x32xf32>
    tpu.vector_store %arg3[%c0_9, %c160], %9 {strides = array<i32>} : memref<16x512xf32, #tpu.memory_space<vmem>>, vector<16x32xf32>,
    %12 = vector.extract_strided_slice %2 {offsets = [0, 96], sizes = [16, 32], strides = [1, 1]} : vector<16x256xf32> to vector<16x32xf32>
    %c0_10 = arith.constant 0 : index
    %c192 = arith.constant 192 : index
    %13 = vector.load %arg3[%c0_10, %c192] : memref<16x512xf32, #tpu.memory_space<vmem>>, vector<16x32xf32>
    tpu.vector_store %arg3[%c0_10, %c192], %12 {strides = array<i32>} : memref<16x512xf32, #tpu.memory_space<vmem>>, vector<16x32xf32>,
    %c0_11 = arith.constant 0 : index
    %c224 = arith.constant 224 : index
    %14 = vector.load %arg3[%c0_11, %c224] : memref<16x512xf32, #tpu.memory_space<vmem>>, vector<16x32xf32>
    tpu.vector_store %arg3[%c0_11, %c224], %12 {strides = array<i32>} : memref<16x512xf32, #tpu.memory_space<vmem>>, vector<16x32xf32>,
    %15 = vector.extract_strided_slice %2 {offsets = [0, 128], sizes = [16, 32], strides = [1, 1]} : vector<16x256xf32> to vector<16x32xf32>
    %c0_12 = arith.constant 0 : index
    %c256 = arith.constant 256 : index
    %16 = vector.load %arg3[%c0_12, %c256] : memref<16x512xf32, #tpu.memory_space<vmem>>, vector<16x32xf32>
    tpu.vector_store %arg3[%c0_12, %c256], %15 {strides = array<i32>} : memref<16x512xf32, #tpu.memory_space<vmem>>, vector<16x32xf32>,
    %c0_13 = arith.constant 0 : index
    %c288 = arith.constant 288 : index
    %17 = vector.load %arg3[%c0_13, %c288] : memref<16x512xf32, #tpu.memory_space<vmem>>, vector<16x32xf32>
    tpu.vector_store %arg3[%c0_13, %c288], %15 {strides = array<i32>} : memref<16x512xf32, #tpu.memory_space<vmem>>, vector<16x32xf32>,
    %18 = vector.extract_strided_slice %2 {offsets = [0, 160], sizes = [16, 32], strides = [1, 1]} : vector<16x256xf32> to vector<16x32xf32>
    %c0_14 = arith.constant 0 : index
    %c320 = arith.constant 320 : index
    %19 = vector.load %arg3[%c0_14, %c320] : memref<16x512xf32, #tpu.memory_space<vmem>>, vector<16x32xf32>
    tpu.vector_store %arg3[%c0_14, %c320], %18 {strides = array<i32>} : memref<16x512xf32, #tpu.memory_space<vmem>>, vector<16x32xf32>,
    %c0_15 = arith.constant 0 : index
    %c352 = arith.constant 352 : index
    %20 = vector.load %arg3[%c0_15, %c352] : memref<16x512xf32, #tpu.memory_space<vmem>>, vector<16x32xf32>
    tpu.vector_store %arg3[%c0_15, %c352], %18 {strides = array<i32>} : memref<16x512xf32, #tpu.memory_space<vmem>>, vector<16x32xf32>,
    %21 = vector.extract_strided_slice %2 {offsets = [0, 192], sizes = [16, 32], strides = [1, 1]} : vector<16x256xf32> to vector<16x32xf32>
    %c0_16 = arith.constant 0 : index
    %c384 = arith.constant 384 : index
    %22 = vector.load %arg3[%c0_16, %c384] : memref<16x512xf32, #tpu.memory_space<vmem>>, vector<16x32xf32>
    tpu.vector_store %arg3[%c0_16, %c384], %21 {strides = array<i32>} : memref<16x512xf32, #tpu.memory_space<vmem>>, vector<16x32xf32>,
    %c0_17 = arith.constant 0 : index
    %c416 = arith.constant 416 : index
    %23 = vector.load %arg3[%c0_17, %c416] : memref<16x512xf32, #tpu.memory_space<vmem>>, vector<16x32xf32>
    tpu.vector_store %arg3[%c0_17, %c416], %21 {strides = array<i32>} : memref<16x512xf32, #tpu.memory_space<vmem>>, vector<16x32xf32>,
    %24 = vector.extract_strided_slice %2 {offsets = [0, 224], sizes = [16, 32], strides = [1, 1]} : vector<16x256xf32> to vector<16x32xf32>
    %c0_18 = arith.constant 0 : index
    %c448 = arith.constant 448 : index
    %25 = vector.load %arg3[%c0_18, %c448] : memref<16x512xf32, #tpu.memory_space<vmem>>, vector<16x32xf32>
    tpu.vector_store %arg3[%c0_18, %c448], %24 {strides = array<i32>} : memref<16x512xf32, #tpu.memory_space<vmem>>, vector<16x32xf32>,
    %c0_19 = arith.constant 0 : index
    %c480 = arith.constant 480 : index
    %26 = vector.load %arg3[%c0_19, %c480] : memref<16x512xf32, #tpu.memory_space<vmem>>, vector<16x32xf32>
    tpu.vector_store %arg3[%c0_19, %c480], %24 {strides = array<i32>} : memref<16x512xf32, #tpu.memory_space<vmem>>, vector<16x32xf32>,
    return
  }
  func.func @transform_0(%arg0: i32) -> (i32, i32) {
    %c0_i32 = arith.constant 0 : i32
    %c0_i32_0 = arith.constant 0 : i32
    return %arg0, %c0_i32 : i32, i32
  }
  func.func @transform_1(%arg0: i32) -> (i32, i32) {
    %c0_i32 = arith.constant 0 : i32
    %c0_i32_0 = arith.constant 0 : i32
    %c0_i32_1 = arith.constant 0 : i32
    return %c0_i32, %c0_i32_0 : i32, i32
  }
  func.func @transform_2(%arg0: i32) -> (i32, i32) {
    %c0_i32 = arith.constant 0 : i32
    %c0_i32_0 = arith.constant 0 : i32
    return %arg0, %c0_i32 : i32, i32
  }
}

</mosaic_0001>

<bundles_post_ra>
// kernel: upsample.1
= control target key start
LH: loop header
LB: loop body
LE: loop exit
PB: predicated region body
PF: predicated region fallthrough
CT: control target
= control target key end

     0   :  { %vm789_vm0 = vcmask 261120   ;;  %s873_s20 = smov 32   ;;  %s874_s23 = smov 96   ;;  %vm800_vm1 = vcmask 523520   ;;  %vm803_vm2 = vcmask 785920   ;;  %vm812_vm3 = vcmask 1048320   ;;  %s1667_s1 = inlined_call_operand.vmem [shape: f32[128,256], index: 1, kind: input, shape index: {}]   ;;  %s1668_s0 = inlined_call_operand.vmem [shape: f32[16,128], index: 0, kind: input, shape index: {}]   ;;  %s1669_s2 = inlined_call_operand.vmem [shape: f32[16,512], index: 2, kind: output, shape index: {}]  }
   0x1   :  { %v43_v0 = vld [vmem:[%s1667_s1 + $0xf0] sm:$0xff]  ;;  %v41_v1 = vld [vmem:[%s1667_s1 + $0xe0] sm:$0xff]  ;;  %v44_v59 = vld [vmem:[%s1667_s1 + $0xf8] sm:$0xff] }
   0x2   :  { %v39_v2 = vld [vmem:[%s1667_s1 + $0xd0] sm:$0xff]  ;;  %v899_v3 = vand.u32 4294901760, %v43_v0  ;;  %v901_v4 = vand.u32 4294901760, %v41_v1  ;;  %v37_v6 = vld [vmem:[%s1667_s1 + $0xc0] sm:$0xff] }
   0x3   :  { %v903_v5 = vand.u32 4294901760, %v39_v2  ;;  %v35_v7 = vld [vmem:[%s1667_s1 + $0xb0] sm:$0xff]  ;;  %v33_v8 = vld [vmem:[%s1667_s1 + $0xa0] sm:$0xff]  ;;  %v914_v9 = vand.u32 4294901760, %v37_v6 }
   0x4   :  { %v916_v10 = vand.u32 4294901760, %v35_v7  ;;  %v918_v11 = vand.u32 4294901760, %v33_v8  ;;  %v31_v12 = vld [vmem:[%s1667_s1 + $0x90] sm:$0xff]  ;;  %v29_v13 = vld [vmem:[%s1667_s1 + $0x80] sm:$0xff]  ;;  %46 = vmatpush.msra.mxu0 %v899_v3  ;;  %v928_v14 = vsub.f32 %v43_v0, %v899_v3  ;;  %v931_v15 = vsub.f32 %v41_v1, %v901_v4  ;;  %259 = vmatpush.msra.mxu3 %v899_v3 }
   0x5   :  { %v935_v16 = vsub.f32 %v39_v2, %v903_v5  ;;  %v937_v17 = vand.u32 4294901760, %v31_v12  ;;  %v27_v18 = vld [vmem:[%s1667_s1 + $0x70] sm:$0xff]  ;;  %v943_v19 = vsub.f32 %v37_v6, %v914_v9  ;;  %v948_v21 = vand.u32 4294901760, %v29_v13  ;;  %v25_v26 = vld [vmem:[%s1667_s1 + $0x60] sm:$0xff]  ;;  %v42_v2 = vld [vmem:[%s1667_s1 + $0xe8] sm:$0xff] }
   0x6   :  { %v946_v20 = vsub.f32 %v35_v7, %v916_v10  ;;  %48 = vmatpush.msra.mxu0 %v901_v4  ;;  %201 = vmatpush.msra.mxu2 %v928_v14  ;;  %v96_v22 = vand.u32 4294901760, %v928_v14  ;;  %v102_v23 = vand.u32 4294901760, %v931_v15  ;;  %v956_v25 = vsub.f32 %v33_v8, %v918_v11  ;;  %v23_v36 = vld [vmem:[%s1667_s1 + $0x50] sm:$0xff]  ;;  %v21_v42 = vld [vmem:[%s1667_s1 + $0x40] sm:$0xff] }
   0x7   :  { %v1683_v24 = vand.u32 4294901760, %v935_v16  ;;  %261 = vmatpush.msra.mxu3 %v901_v4  ;;  %v1682_v27 = vand.u32 4294901760, %v943_v19  ;;  %v963_v28 = vand.u32 4294901760, %v27_v18  ;;  %v966_v29 = vsub.f32 %v31_v12, %v937_v17  ;;  %v19_v48 = vld [vmem:[%s1667_s1 + $0x30] sm:$0xff]  ;;  %v17_v54 = vld [vmem:[%s1667_s1 + $0x20] sm:$0xff] }
   0x8   :  { %50 = vmatpush.msra.mxu0 %v903_v5  ;;  %204 = vmatpush.msra.mxu2 %v931_v15  ;;  %v97_v30 = vsub.f32 %v928_v14, %v96_v22  ;;  %v103_v31 = vsub.f32 %v931_v15, %v102_v23  ;;  %v1679_v33 = vand.u32 4294901760, %v946_v20  ;;  %v981_v34 = vand.u32 4294901760, %v25_v26  ;;  %v15_v61 = vld [vmem:[%s1667_s1 + $0x10] sm:$0xff]  ;;  %v13_v7 = vld [vmem:[%s1667_s1] sm:$0xff] }
   0x9   :  { %v109_v32 = vsub.f32 %v935_v16, %v1683_v24  ;;  %263 = vmatpush.msra.mxu3 %v903_v5  ;;  %v984_v35 = vsub.f32 %v29_v13, %v948_v21  ;;  %v115_v39 = vsub.f32 %v943_v19, %v1682_v27  ;;  %v1678_v40 = vand.u32 4294901760, %v956_v25 }
   0xa   :  { %52 = vmatpush.msra.mxu0 %v914_v9  ;;  %v98_v37 = vand.u32 4294901760, %v97_v30  ;;  %207 = vmatpush.msra.mxu2 %v935_v16  ;;  %v104_v38 = vand.u32 4294901760, %v103_v31  ;;  %v1676_v41 = vand.u32 4294901760, %v966_v29  ;;  %v121_v44 = vsub.f32 %v946_v20, %v1679_v33  ;;  %v40_v30 = vld [vmem:[%s1667_s1 + $0xd8] sm:$0xff] }
   0xb   :  { %265 = vmatpush.msra.mxu3 %v914_v9  ;;  %v110_v43 = vand.u32 4294901760, %v109_v32  ;;  %v1004_v45 = vand.u32 4294901760, %v23_v36  ;;  %v1007_v46 = vsub.f32 %v27_v18, %v963_v28  ;;  %v1675_v47 = vand.u32 4294901760, %v984_v35 }
   0xc   :  { %54 = vmatpush.msra.mxu0 %v916_v10  ;;  %99 = vmatpush.msra.mxu1 %v98_v37  ;;  %v116_v49 = vand.u32 4294901760, %v115_v39  ;;  %v127_v50 = vsub.f32 %v956_v25, %v1678_v40  ;;  %v1019_v51 = vand.u32 4294901760, %v21_v42  ;;  %v1022_v52 = vsub.f32 %v25_v26, %v981_v34 }
   0xd   :  { %210 = vmatpush.msra.mxu2 %v943_v19  ;;  %267 = vmatpush.msra.mxu3 %v916_v10  ;;  %v133_v53 = vsub.f32 %v966_v29, %v1676_v41  ;;  %v122_v55 = vand.u32 4294901760, %v121_v44  ;;  %v1033_v56 = vand.u32 4294901760, %v19_v48  ;;  %v1674_v57 = vand.u32 4294901760, %v1007_v46 }
   0xe   :  { %56 = vmatpush.msra.mxu0 %v918_v11  ;;  %105 = vmatpush.msra.mxu1 %v104_v38  ;;  %v1037_v58 = vsub.f32 %v23_v36, %v1004_v45  ;;  %v139_v60 = vsub.f32 %v984_v35, %v1675_v47  ;;  %v128_v62 = vand.u32 4294901760, %v127_v50  ;;  %v1051_v63 = vand.u32 4294901760, %v17_v54 }
   0xf   :  { %213 = vmatpush.msra.mxu2 %v946_v20  ;;  %269 = vmatpush.msra.mxu3 %v918_v11  ;;  %v1672_v0 = vand.u32 4294901760, %v1022_v52  ;;  %v1055_v1 = vsub.f32 %v21_v42, %v1019_v51  ;;  %v134_v6 = vand.u32 4294901760, %v133_v53  ;;  %v1065_v8 = vand.u32 4294901760, %v44_v59  ;;  %v38_v42 = vld [vmem:[%s1667_s1 + $0xc8] sm:$0xff] }
  0x10   :  { %58 = vmatpush.msra.mxu0 %v937_v17  ;;  %111 = vmatpush.msra.mxu1 %v110_v43  ;;  %v145_v12 = vsub.f32 %v1007_v46, %v1674_v57  ;;  %v1071_v13 = vand.u32 4294901760, %v15_v61  ;;  %v1671_v18 = vand.u32 4294901760, %v1037_v58  ;;  %v1075_v26 = vsub.f32 %v19_v48, %v1033_v56 }
  0x11   :  { %216 = vmatpush.msra.mxu2 %v956_v25  ;;  %271 = vmatpush.msra.mxu3 %v937_v17  ;;  %v140_v31 = vand.u32 4294901760, %v139_v60  ;;  %v1082_v32 = vand.u32 4294901760, %v42_v2  ;;  %v151_v36 = vsub.f32 %v1022_v52, %v1672_v0  ;;  %v1088_v37 = vand.u32 4294901760, %v13_v7 }
  0x12   :  { %60 = vmatpush.msra.mxu0 %v948_v21  ;;  %117 = vmatpush.msra.mxu1 %v116_v49  ;;  %v1670_v38 = vand.u32 4294901760, %v1055_v1  ;;  %v1092_v39 = vsub.f32 %v17_v54, %v1051_v63  ;;  %v1100_v43 = vsub.f32 %v44_v59, %v1065_v8  ;;  %v1102_v44 = vand.u32 4294901760, %v40_v30  ;;  %v36_v59 = vld [vmem:[%s1667_s1 + $0xb8] sm:$0xff] }
  0x13   :  { %219 = vmatpush.msra.mxu2 %v966_v29  ;;  %273 = vmatpush.msra.mxu3 %v948_v21  ;;  %v146_v48 = vand.u32 4294901760, %v145_v12  ;;  %v157_v49 = vsub.f32 %v1037_v58, %v1671_v18  ;;  %v1673_v50 = vand.u32 4294901760, %v1075_v26  ;;  %v1110_v53 = vsub.f32 %v15_v61, %v1071_v13 }
  0x14   :  { %62 = vmatpush.msra.mxu0 %v963_v28  ;;  %123 = vmatpush.msra.mxu1 %v122_v55  ;;  %1692 = vst [vmem:[#allocation2_spill] sm:$0xff] %v1102_v44  ;;  %v1115_v54 = vsub.f32 %v42_v2, %v1082_v32  ;;  %v1117_v55 = vand.u32 4294901760, %v38_v42  ;;  %v152_v60 = vand.u32 4294901760, %v151_v36  ;;  %v163_v61 = vsub.f32 %v1055_v1, %v1670_v38 }
  0x15   :  { %222 = vmatpush.msra.mxu2 %v984_v35  ;;  %275 = vmatpush.msra.mxu3 %v963_v28  ;;  %v1680_v2 = vand.u32 4294901760, %v1100_v43  ;;  %v1134_v12 = vsub.f32 %v40_v30, %v1102_v44  ;;  %v158_v36 = vand.u32 4294901760, %v157_v49  ;;  %v1681_v38 = vand.u32 4294901760, %v1110_v53 }
  0x16   :  { %64 = vmatpush.msra.mxu0 %v981_v34  ;;  %129 = vmatpush.msra.mxu1 %v128_v62  ;;  %v1677_v62 = vand.u32 4294901760, %v1092_v39  ;;  %v1144_v18 = vand.u32 4294901760, %v36_v59  ;;  %v1684_v30 = vand.u32 4294901760, %v1115_v54  ;;  %v1150_v0 = vsub.f32 %v38_v42, %v1117_v55 }
  0x17   :  { %225 = vmatpush.msra.mxu2 %v1007_v46  ;;  %277 = vmatpush.msra.mxu3 %v981_v34  ;;  %v164_v49 = vand.u32 4294901760, %v163_v61  ;;  %v469_v42 = vsub.f32 %v1100_v43, %v1680_v2  ;;  %v1686_v41 = vand.u32 4294901760, %v1134_v12 }
  0x18   :  { %66 = vmatpush.msra.mxu0 %v1004_v45  ;;  %135 = vmatpush.msra.mxu1 %v134_v6  ;;  %v1128_v6 = vsub.f32 %v13_v7, %v1088_v37  ;;  %v169_v7 = vsub.f32 %v1075_v26, %v1673_v50  ;;  %v175_v50 = vsub.f32 %v1092_v39, %v1677_v62 }
  0x19   :  { %228 = vmatpush.msra.mxu2 %v1022_v52  ;;  %279 = vmatpush.msra.mxu3 %v1004_v45  ;;  %v181_v62 = vsub.f32 %v1110_v53, %v1681_v38  ;;  %v1176_v40 = vsub.f32 %v36_v59, %v1144_v18  ;;  %v475_v2 = vsub.f32 %v1115_v54, %v1684_v30  ;;  %v470_v30 = vand.u32 4294901760, %v469_v42 }
  0x1a   :  { %68 = vmatpush.msra.mxu0 %v1019_v51  ;;  %141 = vmatpush.msra.mxu1 %v140_v31  ;;  %v34_v31 = vld [vmem:[%s1667_s1 + $0xa8] sm:$0xff]  ;;  %v1685_v57 = vand.u32 4294901760, %v1128_v6  ;;  %v170_v61 = vand.u32 4294901760, %v169_v7  ;;  %v11_v7 = vld [vmem:[%s1668_s0] sm:$0xff]  ;;  %v176_v59 = vand.u32 4294901760, %v175_v50  ;;  %v28_v50 = vld [vmem:[%s1667_s1 + $0x78] sm:$0xff] }
  0x1b   :  { %231 = vmatpush.msra.mxu2 %v1037_v58  ;;  %281 = vmatpush.msra.mxu3 %v1019_v51  ;;  %v1160_v47 = vand.u32 4294901760, %v34_v31  ;;  %v476_v42 = vand.u32 4294901760, %v475_v2 }
  0x1c   :  { %70 = vmatpush.msra.mxu0 %v1033_v56  ;;  %147 = vmatpush.msra.mxu1 %v146_v48  ;;  %v32_v48 = vld [vmem:[%s1667_s1 + $0x98] sm:$0xff]  ;;  %v187_v38 = vsub.f32 %v1128_v6, %v1685_v57  ;;  %v182_v57 = vand.u32 4294901760, %v181_v62  ;;  %v26_v62 = vld [vmem:[%s1667_s1 + $0x68] sm:$0xff] }
  0x1d   :  { %234 = vmatpush.msra.mxu2 %v1055_v1  ;;  %283 = vmatpush.msra.mxu3 %v1033_v56  ;;  %v1178_v33 = vand.u32 4294901760, %v32_v48  ;;  %v1194_v27 = vsub.f32 %v34_v31, %v1160_v47  ;;  %v1225_v31 = vand.u32 4294901760, %v28_v50 }
  0x1e   :  { %72 = vmatpush.msra.mxu0 %v1051_v63  ;;  %153 = vmatpush.msra.mxu1 %v152_v60  ;;  %v30_v60 = vld [vmem:[%s1667_s1 + $0x88] sm:$0xff] }
  0x1f   :  { %237 = vmatpush.msra.mxu2 %v1075_v26  ;;  %285 = vmatpush.msra.mxu3 %v1051_v63  ;;  %v1196_v24 = vand.u32 4294901760, %v30_v60  ;;  %v1210_v14 = vsub.f32 %v32_v48, %v1178_v33  ;;  %v188_v48 = vand.u32 4294901760, %v187_v38  ;;  %v1694_v38 = vand.u32 4294901760, %v1176_v40 }
  0x20   :  { %74 = vmatpush.msra.mxu0 %v1071_v13  ;;  %159 = vmatpush.msra.mxu1 %v158_v36  ;;  %v1687_v36 = vand.u32 4294901760, %v1150_v0 }
  0x21   :  { %240 = vmatpush.msra.mxu2 %v1092_v39  ;;  %287 = vmatpush.msra.mxu3 %v1071_v13  ;;  %v1228_v15 = vsub.f32 %v30_v60, %v1196_v24 }
  0x22   :  { %76 = vmatpush.msra.mxu0 %v1088_v37  ;;  %165 = vmatpush.msra.mxu1 %v164_v49  ;;  %v481_v49 = vsub.f32 %v1134_v12, %v1686_v41  ;;  %v1253_v41 = vsub.f32 %v28_v50, %v1225_v31 }
  0x23   :  { %243 = vmatpush.msra.mxu2 %v1110_v53  ;;  %289 = vmatpush.msra.mxu3 %v1088_v37 }
  0x24   :  { %306 = vmatpush.msrb.mxu0 %v96_v22  ;;  %171 = vmatpush.msra.mxu1 %v170_v61  ;;  %v1212_v22 = vand.u32 4294901760, %v11_v7  ;;  %v487_v61 = vsub.f32 %v1150_v0, %v1687_v36  ;;  %v482_v2 = vand.u32 4294901760, %v481_v49  ;;  %v24_v36 = vld [vmem:[%s1667_s1 + $0x58] sm:$0xff] }
  0x25   :  { %246 = vmatpush.msra.mxu2 %v1128_v6  ;;  %471 = vmatpush.msrb.mxu3 %v470_v30  ;;  %v1695_v30 = vand.u32 4294901760, %v943_v19  ;;  %v22_v19 = vld [vmem:[%s1667_s1 + $0x48] sm:$0xff] }
  0x26   :  { %310 = vmatpush.msrb.mxu0 %v102_v23  ;;  %177 = vmatpush.msra.mxu1 %v176_v59  ;;  %v1693_v23 = vand.u32 4294901760, %v935_v16  ;;  %v493_v59 = vsub.f32 %v1176_v40, %v1694_v38  ;;  %v1241_v60 = vsub.f32 %v11_v7, %v1212_v22  ;;  %v1243_v16 = vand.u32 4294901760, %v26_v62 }
  0x27   :  { %418 = vmatpush.msrb.mxu2 %v1065_v8  ;;  %477 = vmatpush.msrb.mxu3 %v476_v42  ;;  %v488_v49 = vand.u32 4294901760, %v487_v61  ;;  %v1255_v7 = vand.u32 4294901760, %v24_v36  ;;  %v12_v42 = vld [vmem:[%s1668_s0 + $0x8] sm:$0xff]  ;;  %v1697_v61 = vand.u32 4294901760, %v946_v20  ;;  %v20_v20 = vld [vmem:[%s1667_s1 + $0x38] sm:$0xff] }
  0x28   :  { %314 = vmatpush.msrb.mxu0 %v1693_v23  ;;  %183 = vmatpush.msra.mxu1 %v182_v57  ;;  %v1696_v57 = vand.u32 4294901760, %v1194_v27  ;;  %v494_v50 = vand.u32 4294901760, %v493_v59  ;;  %v1274_v38 = vsub.f32 %v26_v62, %v1243_v16  ;;  %v1700_v62 = vand.u32 4294901760, %v1228_v15 }
  0x29   :  { %420 = vmatpush.msrb.mxu2 %v1082_v32  ;;  %483 = vmatpush.msrb.mxu3 %v482_v2  ;;  %v1284_v2 = vand.u32 4294901760, %v12_v42 }
  0x2a   :  { %318 = vmatpush.msrb.mxu0 %v1695_v30  ;;  %189 = vmatpush.msra.mxu1 %v188_v48  ;;  %v499_v23 = vsub.f32 %v1194_v27, %v1696_v57  ;;  %v1698_v48 = vand.u32 4294901760, %v1210_v14  ;;  %v1271_v57 = vand.u32 4294901760, %v1241_v60 }
  0x2b   :  { %422 = vmatpush.msrb.mxu2 %v1102_v44  ;;  %v1699_v44 = vand.u32 4294901760, %v956_v25  ;;  %489 = vmatpush.msrb.mxu3 %v488_v49  ;;  %v1690_v25 = vand.u32 4294901760, %v1253_v41 }
  0x2c   :  { %322 = vmatpush.msrb.mxu0 %v1697_v61  ;;  %377 = vmatpush.msrb.mxu1 %v899_v3  ;;  %v505_v30 = vsub.f32 %v1210_v14, %v1698_v48  ;;  %v1279_v3 = vand.u32 4294901760, %v22_v19  ;;  %v500_v59 = vand.u32 4294901760, %v499_v23  ;;  %v511_v61 = vsub.f32 %v1228_v15, %v1700_v62  ;;  %v18_v48 = vld [vmem:[%s1667_s1 + $0x28] sm:$0xff] }
  0x2d   :  { %424 = vmatpush.msrb.mxu2 %v1117_v55  ;;  %495 = vmatpush.msrb.mxu3 %v494_v50  ;;  %v80_v23 = vsub.f32 %v1241_v60, %v1271_v57  ;;  %v1691_v62 = vand.u32 4294901760, %v1274_v38  ;;  %v16_v50 = vld [vmem:[%s1667_s1 + $0x18] sm:$0xff] }
  0x2e   :  { %326 = vmatpush.msrb.mxu0 %v1699_v44  ;;  %379 = vmatpush.msrb.mxu1 %v901_v4  ;;  %v1292_v4 = vsub.f32 %v24_v36, %v1255_v7  ;;  %v1701_v44 = vand.u32 4294901760, %v966_v29  ;;  %v506_v49 = vand.u32 4294901760, %v505_v30  ;;  %v1304_v36 = vand.u32 4294901760, %v20_v20 }
  0x2f   :  { %426 = vmatpush.msrb.mxu2 %v1144_v18  ;;  %v1702_v29 = vand.u32 4294901760, %v984_v35  ;;  %501 = vmatpush.msrb.mxu3 %v500_v59  ;;  %v512_v30 = vand.u32 4294901760, %v511_v61  ;;  %v517_v35 = vsub.f32 %v1253_v41, %v1690_v25  ;;  %v1332_v59 = vand.u32 4294901760, %v80_v23 }
  0x30   :  { %330 = vmatpush.msrb.mxu0 %v1701_v44  ;;  %381 = vmatpush.msrb.mxu1 %v903_v5  ;;  %v1310_v5 = vsub.f32 %v22_v19, %v1279_v3  ;;  %v1313_v44 = vsub.f32 %v12_v42, %v1284_v2  ;;  %v1703_v19 = vand.u32 4294901760, %v1007_v46  ;;  %v14_v42 = vld [vmem:[%s1667_s1 + $0x8] sm:$0xff]  ;;  %v523_v61 = vsub.f32 %v1274_v38, %v1691_v62  ;;  %s872_s1 = smov 64  }
  0x31   :  { %428 = vmatpush.msrb.mxu2 %v1160_v47  ;;  %507 = vmatpush.msrb.mxu3 %v506_v49  ;;  %v1338_v25 = vsub.f32 %v20_v20, %v1304_v36  ;;  %v1340_v46 = vand.u32 4294901760, %v16_v50  ;;  %v518_v23 = vand.u32 4294901760, %v517_v35 }
  0x32   :  { %334 = vmatpush.msrb.mxu0 %v1702_v29  ;;  %383 = vmatpush.msrb.mxu1 %v914_v9  ;;  %v528_v9 = vand.u32 4294901760, %v1292_v4  ;;  %v1323_v29 = vand.u32 4294901760, %v18_v48  ;;  %v1347_v49 = vand.u32 4294901760, %v1313_v44 }
  0x33   :  { %430 = vmatpush.msrb.mxu2 %v1178_v33  ;;  %513 = vmatpush.msrb.mxu3 %v512_v30  ;;  %v524_v30 = vand.u32 4294901760, %v523_v61  ;;  %v540_v35 = vand.u32 4294901760, %v1338_v25 }
  0x34   :  { %338 = vmatpush.msrb.mxu0 %v1703_v19  ;;  %385 = vmatpush.msrb.mxu1 %v916_v10  ;;  %v1704_v10 = vand.u32 4294901760, %v1022_v52  ;;  %v534_v19 = vand.u32 4294901760, %v1310_v5  ;;  %v529_v20 = vsub.f32 %v1292_v4, %v528_v9  ;;  %v1354_v62 = vsub.f32 %v18_v48, %v1323_v29 }
  0x35   :  { %432 = vmatpush.msrb.mxu2 %v1196_v24  ;;  %v1356_v52 = vand.u32 4294901760, %v14_v42  ;;  %82 = vmatmul.f32.vlgmr.msra.gmra.mxu0 %v1332_v59  ;;  %v1706_v48 = vand.u32 4294901760, %v1055_v1  ;;  %v1707_v1 = vand.u32 4294901760, %v1075_v26 }
  0x36   :  { %342 = vmatpush.msrb.mxu0 %v1704_v10  ;;  %387 = vmatpush.msrb.mxu1 %v918_v11  ;;  %v1705_v11 = vand.u32 4294901760, %v1037_v58  ;;  %v1365_v10 = vsub.f32 %v16_v50, %v1340_v46  ;;  %v535_v58 = vsub.f32 %v1310_v5, %v534_v19  ;;  %v530_v61 = vand.u32 4294901760, %v529_v20 }
  0x37   :  { %434 = vmatpush.msrb.mxu2 %v1225_v31  ;;  %519 = vmatpush.msrb.mxu3 %v518_v23  ;;  %v1378_v50 = vsub.f32 %v14_v42, %v1356_v52  ;;  %v1708_v20 = vand.u32 4294901760, %v1092_v39 }
  0x38   :  { %346 = vmatpush.msrb.mxu0 %v1705_v11  ;;  %389 = vmatpush.msrb.mxu1 %v937_v17  ;;  %v88_v17 = vsub.f32 %v1313_v44, %v1347_v49  ;;  %v546_v11 = vand.u32 4294901760, %v1354_v62  ;;  %v552_v23 = vand.u32 4294901760, %v1365_v10  ;;  %v536_v42 = vand.u32 4294901760, %v535_v58 }
  0x39   :  { %436 = vmatpush.msrb.mxu2 %v1243_v16  ;;  %191 = vmatmul.f32.vlgmr.msra.gmra.mxu1 %v1212_v22  ;;  %v558_v26 = vand.u32 4294901760, %v1378_v50  ;;  %v1710_v58 = vand.u32 4294901760, %v1128_v6 }
  0x3a   :  { %350 = vmatpush.msrb.mxu0 %v1706_v48  ;;  %391 = vmatpush.msrb.mxu1 %v948_v21  ;;  %v541_v21 = vsub.f32 %v1338_v25, %v540_v35  ;;  %v1391_v48 = vand.u32 4294901760, %v88_v17  ;;  %v553_v39 = vsub.f32 %v1365_v10, %v552_v23 }
  0x3b   :  { %438 = vmatpush.msrb.mxu2 %v1255_v7  ;;  %525 = vmatpush.msrb.mxu3 %v524_v30  ;;  %v1709_v30 = vand.u32 4294901760, %v1110_v53 }
  0x3c   :  { %354 = vmatpush.msrb.mxu0 %v1707_v1  ;;  %393 = vmatpush.msrb.mxu1 %v963_v28  ;;  %v547_v28 = vsub.f32 %v1354_v62, %v546_v11  ;;  %v554_v53 = vand.u32 4294901760, %v553_v39 }
  0x3d   :  { %440 = vmatpush.msrb.mxu2 %v1279_v3  ;;  %531 = vmatpush.msrb.mxu3 %v530_v61 }
  0x3e   :  { %358 = vmatpush.msrb.mxu0 %v1708_v20  ;;  %395 = vmatpush.msrb.mxu1 %v981_v34  ;;  %v542_v34 = vand.u32 4294901760, %v541_v21  ;;  %v548_v17 = vand.u32 4294901760, %v547_v28 }
  0x3f   :  { %249 = vmatmul.f32.vlgmr.msra.gmra.mxu2 %v1241_v60  ;;  %537 = vmatpush.msrb.mxu3 %v536_v42 }
  0x40   :  { %362 = vmatpush.msrb.mxu0 %v1709_v30  ;;  %397 = vmatpush.msrb.mxu1 %v1004_v45  ;;  %v559_v45 = vsub.f32 %v1378_v50, %v558_v26 }
  0x41   :  { %442 = vmatpush.msrb.mxu2 %v1304_v36  ;;  %90 = vmatmul.f32.gmra.mxu0 %v1391_v48 }
  0x42   :  { %293 = vmatmul.f32.vlgmr.msra.gmra.mxu3 %v1271_v57  ;;  %366 = vmatpush.msrb.mxu0 %v1710_v58  ;;  %v560_v6 = vand.u32 4294901760, %v559_v45 }
  0x43   :  { %399 = vmatpush.msrb.mxu1 %v1019_v51  ;;  %444 = vmatpush.msrb.mxu2 %v1323_v29  ;;  %v1711_v51 = vand.u32 4294901760, %v1100_v43 }
  0x44   :  { %543 = vmatpush.msrb.mxu3 %v542_v34  ;;  %195 = vmatmul.f32.gmra.mxu1 %v1284_v2 }
  0x45   :  { %573 = vmatpush.msra.mxu0 %v1100_v43  ;;  %401 = vmatpush.msrb.mxu1 %v1033_v56  ;;  %v1712_v56 = vand.u32 4294901760, %v1115_v54 }
  0x46   :  { %446 = vmatpush.msrb.mxu2 %v1340_v46  ;;  %549 = vmatpush.msrb.mxu3 %v548_v17 }
  0x47   :  { %576 = vmatpush.msra.mxu0 %v1115_v54  ;;  %403 = vmatpush.msrb.mxu1 %v1051_v63  ;;  %v1713_v63 = vand.u32 4294901760, %v1134_v12 }
  0x48   :  { %448 = vmatpush.msrb.mxu2 %v1356_v52  ;;  %555 = vmatpush.msrb.mxu3 %v554_v53 }
  0x49   :  { %579 = vmatpush.msra.mxu0 %v1134_v12  ;;  %405 = vmatpush.msrb.mxu1 %v1071_v13  ;;  %v1714_v13 = vand.u32 4294901760, %v1150_v0 }
  0x4a   :  { %678 = vmatpush.msra.mxu2 %v1711_v51  ;;  %561 = vmatpush.msrb.mxu3 %v560_v6 }
  0x4b   :  { %368 = vmatmul.f32.vlgmr.msrb.gmra.mxu0 %v1212_v22  ;;  %407 = vmatpush.msrb.mxu1 %v1088_v37  ;;  %v1715_v37 = vld [vmem:[#allocation2_spill] sm:$0xff] }
  0x4c   :  { %682 = vmatpush.msra.mxu2 %v1712_v56  ;;  %582 = vmatpush.msra.mxu0 %v1150_v0  ;;  %v1718_v0 = vand.u32 4294901760, %v1210_v14 }
  0x4d   :  { %749 = vmatpush.msra.mxu3 %v1065_v8  ;;  %254 = vmatmul.f32.gmra.mxu2 %v1313_v44 }
  0x4e   :  { %409 = vmatmul.f32.vlgmr.msrb.gmra.mxu1 %v1212_v22  ;;  %585 = vmatpush.msra.mxu0 %v1176_v40 }
  0x4f   :  { %631 = vmatpush.msra.mxu1 %v1065_v8  ;;  %686 = vmatpush.msra.mxu2 %v1713_v63  ;;  %v1716_v8 = vand.u32 4294901760, %v1176_v40  ;;  %v1720_v40 = vand.u32 4294901760, %v1253_v41 }
  0x50   :  { %751 = vmatpush.msra.mxu3 %v1082_v32  ;;  %588 = vmatpush.msra.mxu0 %v1194_v27 }
  0x51   :  { %299 = vmatmul.f32.gmra.mxu3 %v1347_v49  ;;  %633 = vmatpush.msra.mxu1 %v1082_v32  ;;  %v1717_v32 = vand.u32 4294901760, %v1194_v27  ;;  %v1719_v27 = vand.u32 4294901760, %v1228_v15 }
  0x52   :  { %690 = vmatpush.msra.mxu2 %v1714_v13  ;;  %753 = vmatpush.msra.mxu3 %v1715_v37 }
  0x53   :  { %591 = vmatpush.msra.mxu0 %v1210_v14  ;;  %635 = vmatpush.msra.mxu1 %v1715_v37 }
  0x54   :  { %694 = vmatpush.msra.mxu2 %v1716_v8  ;;  %755 = vmatpush.msra.mxu3 %v1117_v55 }
  0x55   :  { %594 = vmatpush.msra.mxu0 %v1228_v15  ;;  %637 = vmatpush.msra.mxu1 %v1117_v55 }
  0x56   :  { %698 = vmatpush.msra.mxu2 %v1717_v32  ;;  %757 = vmatpush.msra.mxu3 %v1144_v18 }
  0x57   :  { %597 = vmatpush.msra.mxu0 %v1253_v41  ;;  %639 = vmatpush.msra.mxu1 %v1144_v18 }
  0x58   :  { %702 = vmatpush.msra.mxu2 %v1718_v0  ;;  %759 = vmatpush.msra.mxu3 %v1160_v47 }
  0x59   :  { %372 = vmatmul.f32.gmra.mxu0 %v1284_v2  ;;  %641 = vmatpush.msra.mxu1 %v1160_v47  ;;  %v1721_v47 = vand.u32 4294901760, %v1274_v38 }
  0x5a   :  { %600 = vmatpush.msra.mxu0 %v1274_v38  ;;  %706 = vmatpush.msra.mxu2 %v1719_v27 }
  0x5b   :  { %761 = vmatpush.msra.mxu3 %v1178_v33  ;;  %454 = vmatmul.f32.vlgmr.msrb.gmra.mxu2 %v1332_v59 }
  0x5c   :  { %563 = vmatmul.f32.vlgmr.msrb.gmra.mxu3 %v1212_v22  ;;  %413 = vmatmul.f32.gmra.mxu1 %v1284_v2 }
  0x5d   :  { %603 = vmatpush.msra.mxu0 %v1292_v4  ;;  %643 = vmatpush.msra.mxu1 %v1178_v33 }
  0x5e   :  { %710 = vmatpush.msra.mxu2 %v1720_v40  ;;  %763 = vmatpush.msra.mxu3 %v1196_v24 }
  0x5f   :  { %606 = vmatpush.msra.mxu0 %v1310_v5  ;;  %645 = vmatpush.msra.mxu1 %v1196_v24 }
  0x60   :  { %714 = vmatpush.msra.mxu2 %v1721_v47  ;;  %765 = vmatpush.msra.mxu3 %v1225_v31 }
  0x61   :  { %609 = vmatpush.msra.mxu0 %v1338_v25  ;;  %647 = vmatpush.msra.mxu1 %v1225_v31 }
  0x62   :  { %718 = vmatpush.msra.mxu2 %v528_v9  ;;  %767 = vmatpush.msra.mxu3 %v1243_v16 }
  0x63   :  { %612 = vmatpush.msra.mxu0 %v1354_v62  ;;  %649 = vmatpush.msra.mxu1 %v1243_v16 }
  0x64   :  { %722 = vmatpush.msra.mxu2 %v534_v19  ;;  %769 = vmatpush.msra.mxu3 %v1255_v7 }
  0x65   :  { %462 = vmatmul.f32.gmra.mxu2 %v1391_v48  ;;  %567 = vmatmul.f32.gmra.mxu3 %v1284_v2 }
  0x66   :  { %615 = vmatpush.msra.mxu0 %v1365_v10  ;;  %651 = vmatpush.msra.mxu1 %v1255_v7 }
  0x67   :  { %726 = vmatpush.msra.mxu2 %v540_v35  ;;  %771 = vmatpush.msra.mxu3 %v1279_v3 }
  0x68   :  { %618 = vmatpush.msra.mxu0 %v1378_v50  ;;  %653 = vmatpush.msra.mxu1 %v1279_v3 }
  0x69   :  { %730 = vmatpush.msra.mxu2 %v546_v11  ;;  %773 = vmatpush.msra.mxu3 %v1304_v36 }
  0x6a   :  { %621 = vmatmul.f32.vlgmr.msra.gmra.mxu0 %v1241_v60  ;;  %655 = vmatpush.msra.mxu1 %v1304_v36 }
  0x6b   :  { %734 = vmatpush.msra.mxu2 %v552_v23  ;;  %775 = vmatpush.msra.mxu3 %v1323_v29 }
  0x6c   :  { %657 = vmatpush.msra.mxu1 %v1323_v29 }
  0x6d   :  { %738 = vmatpush.msra.mxu2 %v558_v26  ;;  %777 = vmatpush.msra.mxu3 %v1340_v46 }
  0x6e   :  { %740 = vmatmul.f32.vlgmr.msra.gmra.mxu2 %v1212_v22  ;;  %659 = vmatpush.msra.mxu1 %v1340_v46 }
  0x6f   :  { %779 = vmatpush.msra.mxu3 %v1356_v52 }
  0x70   :  { %781 = vmatmul.f32.vlgmr.msra.gmra.mxu3 %v1212_v22  ;;  %661 = vmatpush.msra.mxu1 %v1356_v52 }
  0x71   :  { %665 = vmatmul.f32.vlgmr.msra.gmra.mxu1 %v1271_v57 }
  0x72   :  { %626 = vmatmul.f32.gmra.mxu0 %v1313_v44 }
  0x76   :  { %744 = vmatmul.f32.gmra.mxu2 %v1284_v2 }
  0x78   :  { %785 = vmatmul.f32.gmra.mxu3 %v1284_v2 }
  0x79   :  { %671 = vmatmul.f32.gmra.mxu1 %v1347_v49 }
  0xb2   :  { %v83_v24 = vpop.f32.mrf.mxu0 }
  0xb6   :  { %v192_v33 = vpop.f32.mrf.mxu1 }
  0xb7   :  { %v193_v18 = vadd.f32 %v192_v33, %v83_v24 }
  0xbe   :  { %v91_v41 = vpop.f32.mrf.mxu0 }
  0xc1   :  { %v196_v43 = vpop.f32.mrf.mxu1 }
  0xc2   :  { %v250_v54 = vpop.f32.mrf.mxu2  ;;  %v197_v16 = vadd.f32 %v196_v43, %v91_v41 }
  0xc3   :  { %v251_v55 = vadd.f32 %v250_v54, %v193_v18 }
  0xc5   :  { %v294_v12 = vpop.f32.mrf.mxu3 }
  0xc6   :  { %v295_v31 = vadd.f32 %v294_v12, %v251_v55 }
  0xc8   :  { %v369_v14 = vpop.f32.mrf.mxu0 }
  0xc9   :  { %v370_v22 = vadd.f32 %v369_v14, %v295_v31 }
  0xcb   :  { %v410_v15 = vpop.f32.mrf.mxu1 }
  0xcc   :  { %v1520_v60 = vadd.f32 %v410_v15, %v370_v22 }
  0xce   :  { %806 = vrot.lane.b32.xlu0 %v1520_v60, %s872_s1  ;;  %794 = vrot.lane.b32.xlu2 %v1520_v60, %s873_s20  ;;  %790 = vst.msk [vmem:[%s1669_s2] sm:$0xff] %vm789_vm0, %v1520_v60 }
  0xd0   :  { %v255_v38 = vpop.f32.mrf.mxu2 }
  0xd1   :  { %v256_v7 = vadd.f32 %v255_v38, %v197_v16 }
  0xd4   :  { %v300_v57 = vpop.f32.mrf.mxu3 }
  0xd5   :  { %v301_v3 = vadd.f32 %v300_v57, %v256_v7 }
  0xd6   :  { %v373_v2 = vpop.f32.mrf.mxu0  ;;  %817 = vrot.lane.b32.xlu0 %v1520_v60, %s874_s23 }
  0xd7   :  { %v374_v25 = vadd.f32 %v373_v2, %v301_v3 }
  0xd9   :  { %v414_v4 = vpop.f32.mrf.mxu1 }
  0xda   :  { %v415_v62 = vadd.f32 %v414_v4, %v374_v25 }
  0xdc   :  { %796 = vrot.lane.b32.xlu2 %v415_v62, %s873_s20  ;;  %819 = vrot.lane.b32.xlu1 %v415_v62, %s874_s23  ;;  %791 = vst.msk [vmem:[%s1669_s2 + $0x20] sm:$0xff] %vm789_vm0, %v415_v62 }
  0xde   :  { %v455_v36 = vpop.f32.mrf.mxu2  ;;  %808 = vrot.lane.b32.xlu0 %v415_v62, %s872_s1 }
  0xdf   :  { %v564_v5 = vpop.f32.mrf.mxu3 }
  0xe0   :  { %v565_v29 = vadd.f32 %v564_v5, %v455_v36 }
  0xe7   :  { %v622_v44 = vpop.f32.mrf.mxu0 }
  0xe8   :  { %v463_v9 = vpop.f32.mrf.mxu2  ;;  %v568_v59 = vpop.f32.mrf.mxu3  ;;  %v623_v46 = vadd.f32 %v622_v44, %v565_v29 }
  0xe9   :  { %v569_v61 = vadd.f32 %v568_v59, %v463_v9 }
  0xee   :  { %v666_v19 = vpop.f32.mrf.mxu1 }
  0xef   :  { %v667_v49 = vadd.f32 %v666_v19, %v623_v46  ;;  %v627_v35 = vpop.f32.mrf.mxu0 }
  0xf0   :  { %v628_v1 = vadd.f32 %v627_v35, %v569_v61 }
  0xf1   :  { %v741_v52 = vpop.f32.mrf.mxu2 }
  0xf2   :  { %v742_v10 = vadd.f32 %v741_v52, %v667_v49 }
  0xf3   :  { %v782_v11 = vpop.f32.mrf.mxu3 }
  0xf4   :  { %v783_v50 = vadd.f32 %v782_v11, %v742_v10 }
  0xf6   :  { %843 = vrot.lane.b32.xlu1 %v783_v50, %s872_s1  ;;  %833 = vrot.lane.b32.xlu2 %v783_v50, %s873_s20  ;;  %v672_v21 = vpop.f32.mrf.mxu1  ;;  %829 = vst.msk [vmem:[%s1669_s2 + $0x10] sm:$0xff] %vm789_vm0, %v783_v50 }
  0xf7   :  { %v673_v23 = vadd.f32 %v672_v21, %v628_v1 }
  0xf9   :  { %v745_v20 = vpop.f32.mrf.mxu2 }
  0xfa   :  { %v746_v42 = vadd.f32 %v745_v20, %v673_v23 }
  0xfb   :  { %v786_v48 = vpop.f32.mrf.mxu3 }
  0xfc   :  { %v787_v28 = vadd.f32 %v786_v48, %v746_v42 }
  0xfe   :  { %845 = vrot.lane.b32.xlu1 %v787_v28, %s872_s1  ;;  %855 = vrot.lane.b32.xlu2 %v787_v28, %s874_s23  ;;  %830 = vst.msk [vmem:[%s1669_s2 + $0x30] sm:$0xff] %vm789_vm0, %v787_v28 }
  0xff   :  { %835 = vrot.lane.b32.xlu0 %v787_v28, %s873_s20 }
 0x106   :  { %853 = vrot.lane.b32.xlu1 %v783_v50, %s874_s23 }
 0x128   :  { %v795_v26 = vpop.permute.xlu2 %794 }
 0x129   :  { %801 = vst.msk [vmem:[%s1669_s2] sm:$0xff] %vm800_vm1, %v795_v26 }
 0x12a   :  { %804 = vst.msk [vmem:[%s1669_s2] sm:$0xff] %vm803_vm2, %v795_v26 }
 0x136   :  { %v797_v30 = vpop.permute.xlu2 %796 }
 0x137   :  { %802 = vst.msk [vmem:[%s1669_s2 + $0x20] sm:$0xff] %vm800_vm1, %v797_v30 }
 0x138   :  { %805 = vst.msk [vmem:[%s1669_s2 + $0x20] sm:$0xff] %vm803_vm2, %v797_v30 }
 0x140   :  { %v807_v34 = vpop.permute.xlu0 %806 }
 0x141   :  { %813 = vst.msk [vmem:[%s1669_s2] sm:$0xff] %vm812_vm3, %v807_v34 }
 0x142   :  { %815 = vst.msk [vmem:[%s1669_s2 + $0x8] sm:$0xff] %vm789_vm0, %v807_v34 }
 0x148   :  { %v818_v39 = vpop.permute.xlu0 %817 }
 0x149   :  { %823 = vst.msk [vmem:[%s1669_s2 + $0x8] sm:$0xff] %vm800_vm1, %v818_v39 }
 0x14a   :  { %825 = vst.msk [vmem:[%s1669_s2 + $0x8] sm:$0xff] %vm803_vm2, %v818_v39 }
 0x14b   :  { %827 = vst.msk [vmem:[%s1669_s2 + $0x8] sm:$0xff] %vm812_vm3, %v1520_v60 }
 0x14e   :  { %v820_v45 = vpop.permute.xlu1 %819 }
 0x150   :  { %v834_v58 = vpop.permute.xlu2 %833  ;;  %v809_v17 = vpop.permute.xlu0 %808 }
 0x151   :  { %839 = vst.msk [vmem:[%s1669_s2 + $0x10] sm:$0xff] %vm800_vm1, %v834_v58 }
 0x152   :  { %841 = vst.msk [vmem:[%s1669_s2 + $0x10] sm:$0xff] %vm803_vm2, %v834_v58 }
 0x153   :  { %814 = vst.msk [vmem:[%s1669_s2 + $0x20] sm:$0xff] %vm812_vm3, %v809_v17 }
 0x154   :  { %816 = vst.msk [vmem:[%s1669_s2 + $0x28] sm:$0xff] %vm789_vm0, %v809_v17 }
 0x155   :  { %824 = vst.msk [vmem:[%s1669_s2 + $0x28] sm:$0xff] %vm800_vm1, %v820_v45 }
 0x156   :  { %826 = vst.msk [vmem:[%s1669_s2 + $0x28] sm:$0xff] %vm803_vm2, %v820_v45 }
 0x157   :  { %828 = vst.msk [vmem:[%s1669_s2 + $0x28] sm:$0xff] %vm812_vm3, %v415_v62 }
 0x158   :  { %v856_v51 = vpop.permute.xlu2 %855 }
 0x168   :  { %v844_v53 = vpop.permute.xlu1 %843 }
 0x169   :  { %849 = vst.msk [vmem:[%s1669_s2 + $0x10] sm:$0xff] %vm812_vm3, %v844_v53 }
 0x16a   :  { %851 = vst.msk [vmem:[%s1669_s2 + $0x18] sm:$0xff] %vm789_vm0, %v844_v53 }
 0x170   :  { %v846_v6 = vpop.permute.xlu1 %845 }
 0x171   :  { %852 = vst.msk [vmem:[%s1669_s2 + $0x38] sm:$0xff] %vm789_vm0, %v846_v6  ;;  %v836_v56 = vpop.permute.xlu0 %835 }
 0x172   :  { %860 = vst.msk [vmem:[%s1669_s2 + $0x38] sm:$0xff] %vm800_vm1, %v856_v51 }
 0x173   :  { %862 = vst.msk [vmem:[%s1669_s2 + $0x38] sm:$0xff] %vm803_vm2, %v856_v51 }
 0x174   :  { %864 = vst.msk [vmem:[%s1669_s2 + $0x38] sm:$0xff] %vm812_vm3, %v787_v28 }
 0x175   :  { %840 = vst.msk [vmem:[%s1669_s2 + $0x30] sm:$0xff] %vm800_vm1, %v836_v56 }
 0x176   :  { %842 = vst.msk [vmem:[%s1669_s2 + $0x30] sm:$0xff] %vm803_vm2, %v836_v56 }
 0x177   :  { %850 = vst.msk [vmem:[%s1669_s2 + $0x30] sm:$0xff] %vm812_vm3, %v846_v6 }
 0x178   :  { %v854_v63 = vpop.permute.xlu1 %853 }
 0x179   :  { %859 = vst.msk [vmem:[%s1669_s2 + $0x18] sm:$0xff] %vm800_vm1, %v854_v63 }
 0x17a   :  { %861 = vst.msk [vmem:[%s1669_s2 + $0x18] sm:$0xff] %vm803_vm2, %v854_v63 }
 0x17b   :  { %863 = vst.msk [vmem:[%s1669_s2 + $0x18] sm:$0xff] %vm812_vm3, %v783_v50 }

</bundles_post_ra>
